<compile_context>
chip_gen: v5e
topology: v5e:2x2
jax: 0.10.0
libtpu: 0.0.40
codegen_flags: <defaults>
</compile_context>

<pallas_src>
import functools

import jax
import jax.numpy as jnp
from jax.experimental import pallas as pl
from jax.experimental.pallas import tpu as pltpu


LN_EPS = 1e-5  # torch.nn.LayerNorm default


def _round_up(a, m):
    return ((a + m - 1) // m) * m


def _masked_layernorm(v, d_true):
    """LayerNorm (no affine) over the last dim of a lane-padded (rows, dpad) tile.

    Padded lanes are zero on input (host-side zero pad), so sums over all dpad
    lanes equal sums over the d_true real lanes; padded lanes are re-zeroed on
    output so they contribute nothing to the fused matmul.
    """
    v = v.astype(jnp.float32)
    dpad = v.shape[-1]
    inv_d = 1.0 / d_true
    mu = jnp.sum(v, axis=-1, keepdims=True) * inv_d
    centered = v - mu
    if dpad != d_true:
        lane = jax.lax.broadcasted_iota(jnp.int32, v.shape, 1)
        centered = jnp.where(lane < d_true, centered, 0.0)
    var = jnp.sum(centered * centered, axis=-1, keepdims=True) * inv_d
    return centered * jax.lax.rsqrt(var + LN_EPS)


def prenorm_kernel(x_ref, ctx_ref, w_ref, bias_ref, out_ref, lhs_ref, *,
                   d_true, c_true):
    dpad = x_ref.shape[-1]

    # LayerNorm both streams and build the fused bf16 LHS once per row tile
    # (first column step only); reused for every output-column tile.
    @pl.when(pl.program_id(1) == 0)
    def _():
        xn = _masked_layernorm(x_ref[...], d_true)
        cn = _masked_layernorm(ctx_ref[...], c_true)
        lhs_ref[:, :dpad] = xn.astype(lhs_ref.dtype)
        lhs_ref[:, dpad:] = cn.astype(lhs_ref.dtype)

    # One MXU pass over the concatenated contraction dim, f32 accumulation.
    acc = jnp.dot(lhs_ref[...], w_ref[...], preferred_element_type=jnp.float32)
    out_ref[...] = (acc + bias_ref[...]).astype(out_ref.dtype)


def prenorm_forward(x, context, params, *, row_tile=256, col_tile=512,
                    matmul_dtype=jnp.bfloat16, input_dtype=None):
    """x: (B, N, D), context: (B, N, C) -> (B, N, D)."""
    B, N, D = x.shape
    C = context.shape[-1]
    R = B * N

    # Lane-dense feature dims (prereq for the aligned [xn | cn] concat).
    Dpad = _round_up(D, 128)
    Cpad = _round_up(C, 128)
    Kp = Dpad + Cpad

    # Output-column tiling: bounds per-step weight VMEM residency for large D.
    tn = min(_round_up(col_tile, 128), Dpad)
    Dout = _round_up(D, tn)            # no ragged column blocks

    # Row tiling: a single full-size block for small R (no padding / no partial
    # blocks), otherwise 256-row tiles (multiple of 16 for bf16 sublane packing)
    # with a ragged last block handled by Pallas (masked writeback).
    # TODO(synk): on dual-TensorCore chips (v7x) force >=2 row grid steps when
    # R <= row_tile so the 'parallel' row axis shards across both cores; on
    # single-TC v5e/v6e a forced split only adds per-step overhead.
    if R <= row_tile:
        rt = R
    else:
        rt = _round_up(row_tile, 16)
    grid = (pl.cdiv(R, rt), Dout // tn)

    # --- host-side operand prep (all folding in f32, then cast) --------------
    # input_dtype=jnp.bfloat16 halves input HBM traffic (v6e HBM-roofline item);
    # default keeps the caller's dtype. LN math is always f32 inside the kernel.
    in_dtype = jnp.dtype(x.dtype if input_dtype is None else input_dtype)

    x2 = x.reshape(R, D)
    c2 = context.reshape(R, C)
    if Dpad != D or x2.dtype != in_dtype:
        x2 = jnp.pad(x2, ((0, 0), (0, Dpad - D))).astype(in_dtype)
    if Cpad != C or c2.dtype != in_dtype:
        c2 = jnp.pad(c2, ((0, 0), (0, Cpad - C))).astype(in_dtype)

    gx = params["ln_x_w"].astype(jnp.float32)
    bx = params["ln_x_b"].astype(jnp.float32)
    gc = params["ln_c_w"].astype(jnp.float32)
    bc = params["ln_c_b"].astype(jnp.float32)
    wx = params["wx"].astype(jnp.float32)
    wc = params["wc"].astype(jnp.float32)
    b0 = params["bias"].astype(jnp.float32)

    # Fold the LayerNorm affine into the projection:
    #   LN(x) @ Wx = xhat @ (gamma[:, None] * Wx) + beta @ Wx
    wx_f = gx[:, None] * wx                          # (D, Dout-true)
    wc_f = gc[:, None] * wc                          # (C, Dout-true)
    bias_f = b0 + bx @ wx + bc @ wc                  # (D,)

    # One concatenated, zero-padded weight (Kp, Dout); padded rows/cols are zero,
    # so padded LHS lanes contribute nothing and padded output columns stay zero.
    w_cat = jnp.zeros((Kp, Dout), jnp.float32)
    w_cat = w_cat.at[:D, :D].set(wx_f)
    w_cat = w_cat.at[Dpad:Dpad + C, :D].set(wc_f)
    w_cat = w_cat.astype(matmul_dtype)

    bias_pad = jnp.zeros((1, Dout), jnp.float32).at[0, :D].set(bias_f)

    # --- byte-accounted, generation-aware VMEM budget -------------------------
    in_b = in_dtype.itemsize
    out_b = jnp.dtype(x.dtype).itemsize
    w_b = jnp.dtype(matmul_dtype).itemsize
    needed = (
        2 * rt * (Dpad + Cpad) * in_b          # double-buffered input row tiles
        + 2 * Kp * tn * w_b                    # double-buffered weight column tiles
        + 2 * 8 * tn * 4                       # bias tiles (8-sublane padded)
        + 2 * rt * tn * out_b                  # double-buffered output tiles
        + rt * Kp * w_b                        # fused bf16 LHS scratch
        + 3 * rt * max(Dpad, Cpad) * 4         # f32 LayerNorm intermediates
    )
    try:
        vmem_cap = int(getattr(pltpu.get_tpu_info(), "vmem_capacity_bytes",
                               64 * 1024 * 1024))
    except Exception:  # interpret mode / AOT on CPU: be conservative
        vmem_cap = 64 * 1024 * 1024
    vmem_limit = int(min(max(int(needed * 1.25), 16 * 1024 * 1024),
                         int(vmem_cap * 0.85)))

    kernel = functools.partial(prenorm_kernel, d_true=D, c_true=C)

    # TODO(synk): when Dout == tn the weight/bias blocks are grid-invariant;
    # pipeline_mode=pl.Buffered(1) on those specs would halve their VMEM
    # residency (most valuable against v7x's 64 MiB VMEM).
    out = pl.pallas_call(
        kernel,
        out_shape=jax.ShapeDtypeStruct((R, Dout), x.dtype),
        grid_spec=pltpu.PrefetchScalarGridSpec(
            num_scalar_prefetch=0,
            grid=grid,
            in_specs=[
                pl.BlockSpec((rt, Dpad), lambda i, j: (i, 0)),   # x rows
                pl.BlockSpec((rt, Cpad), lambda i, j: (i, 0)),   # context rows
                pl.BlockSpec((Kp, tn), lambda i, j: (0, j)),     # fused (gamma-folded) weight
                pl.BlockSpec((1, tn), lambda i, j: (0, j)),      # fused (beta-folded) bias
            ],
            out_specs=pl.BlockSpec((rt, tn), lambda i, j: (i, j)),
            scratch_shapes=[pltpu.VMEM((rt, Kp), matmul_dtype)],  # cached bf16 [xn|cn]
        ),
        compiler_params=pltpu.CompilerParams(
            dimension_semantics=("parallel", "arbitrary"),
            vmem_limit_bytes=vmem_limit),
    )(x2, c2, w_cat, bias_pad)

    if Dout != D:
        out = out[:, :D]
    return out.reshape(B, N, D)


def prenorm_reference(x, context, params):
    def ln(v, g, b):
        v = v.astype(jnp.float32)
        mu = jnp.mean(v, axis=-1, keepdims=True)
        var = jnp.mean((v - mu) ** 2, axis=-1, keepdims=True)
        return (v - mu) / jnp.sqrt(var + LN_EPS) * g + b

    xn = ln(x, params["ln_x_w"], params["ln_x_b"])
    cn = ln(context, params["ln_c_w"], params["ln_c_b"])
    return (xn @ params["wx"] + cn @ params["wc"] + params["bias"]).astype(x.dtype)


if __name__ == "__main__":
    B, N, D, C = 2, 8, 32, 16

    key = jax.random.PRNGKey(0)
    kx, kc, kwx, kwc, kb, kgx, kbx, kgc, kbc = jax.random.split(key, 9)

    x = jax.random.normal(kx, (B, N, D), dtype=jnp.float32)
    context = jax.random.normal(kc, (B, N, C), dtype=jnp.float32)

    params = {
        # non-trivial LayerNorm affine so the host-side gamma/beta folding is exercised
        "ln_x_w": 1.0 + 0.1 * jax.random.normal(kgx, (D,), dtype=jnp.float32),
        "ln_x_b": 0.1 * jax.random.normal(kbx, (D,), dtype=jnp.float32),
        "ln_c_w": 1.0 + 0.1 * jax.random.normal(kgc, (C,), dtype=jnp.float32),
        "ln_c_b": 0.1 * jax.random.normal(kbc, (C,), dtype=jnp.float32),
        # deterministic synthetic fn parameters
        "wx": jax.random.normal(kwx, (D, D), dtype=jnp.float32) * 0.1,
        "wc": jax.random.normal(kwc, (C, D), dtype=jnp.float32) * 0.1,
        "bias": jax.random.normal(kb, (D,), dtype=jnp.float32) * 0.1,
    }

    out = prenorm_forward(x, context, params)
    out = jax.block_until_ready(out)

    ref = prenorm_reference(x, context, params)
    assert out.shape == (B, N, D)
    # bf16 MXU inputs (f32 accumulation) vs an all-f32 reference -> looser tolerance.
    assert jnp.allclose(out, ref, atol=3e-2, rtol=3e-2), "mismatch vs reference"

    print("KERNEL_OK")
</pallas_src>

<mosaic_0001>
module attributes {stable_mosaic.version = 11 : i64} {
  func.func @prenorm_kernel(%arg0: i32, %arg1: i32, %arg2: memref<16x128xf32, #tpu.memory_space<vmem>>, %arg3: memref<16x128xf32, #tpu.memory_space<vmem>>, %arg4: memref<256x128xbf16, #tpu.memory_space<vmem>>, %arg5: memref<1x128xf32, #tpu.memory_space<vmem>>, %arg6: memref<16x128xf32, #tpu.memory_space<vmem>>, %arg7: memref<16x256xbf16, #tpu.memory_space<vmem>>) attributes {dimension_semantics = [#tpu.dimension_semantics<parallel>, #tpu.dimension_semantics<arbitrary>], iteration_bounds = array<i64: 1, 1>, scalar_prefetch = 0 : i64, scratch_operands = 1 : i64, tpu.core_type = #tpu.core_type<tc>, window_params = [{transform_indices = @transform_0, window_bounds = array<i64: 16, 128>}, {transform_indices = @transform_1, window_bounds = array<i64: 16, 128>}, {transform_indices = @transform_2, window_bounds = array<i64: 256, 128>}, {transform_indices = @transform_3, window_bounds = array<i64: 1, 128>}, {transform_indices = @transform_4, window_bounds = array<i64: 16, 128>}]} {
    %c0_i32 = arith.constant 0 : i32
    %0 = arith.cmpi eq, %arg1, %c0_i32 : i32
    %1 = arith.extui %0 : i1 to i32
    %c0_i32_0 = arith.constant 0 : i32
    %2 = arith.cmpi ne, %1, %c0_i32_0 : i32
    scf.if %2 {
      %c0_8 = arith.constant 0 : index
      %c0_9 = arith.constant 0 : index
      %10 = vector.load %arg2[%c0_8, %c0_9] : memref<16x128xf32, #tpu.memory_space<vmem>>, vector<16x128xf32>
      %cst_10 = arith.constant dense<0.000000e+00> : vector<16xf32>
      %11 = vector.multi_reduction <add>, %10, %cst_10 [1] : vector<16x128xf32> to vector<16xf32>
      %12 = vector.shape_cast %11 : vector<16xf32> to vector<16x1xf32>
      %cst_11 = arith.constant 3.125000e-02 : f32
      %13 = vector.broadcast %cst_11 : f32 to vector<16x1xf32>
      %14 = arith.mulf %12, %13 : vector<16x1xf32>
      %15 = vector.broadcast %14 : vector<16x1xf32> to vector<16x128xf32>
      %16 = arith.subf %10, %15 : vector<16x128xf32>
      %17 = tpu.iota {dimensions = array<i32: 1>} : vector<16x128xi32>
      %c32_i32 = arith.constant 32 : i32
      %18 = vector.broadcast %c32_i32 : i32 to vector<16x128xi32>
      %19 = arith.cmpi slt, %17, %18 : vector<16x128xi32>
      %cst_12 = arith.constant 0.000000e+00 : f32
      %20 = vector.broadcast %cst_12 : f32 to vector<16x128xf32>
      %21 = arith.select %19, %16, %20 : vector<16x128xi1>, vector<16x128xf32>
      %22 = arith.mulf %21, %21 : vector<16x128xf32>
      %cst_13 = arith.constant dense<0.000000e+00> : vector<16xf32>
      %23 = vector.multi_reduction <add>, %22, %cst_13 [1] : vector<16x128xf32> to vector<16xf32>
      %24 = vector.shape_cast %23 : vector<16xf32> to vector<16x1xf32>
      %cst_14 = arith.constant 3.125000e-02 : f32
      %25 = vector.broadcast %cst_14 : f32 to vector<16x1xf32>
      %26 = arith.mulf %24, %25 : vector<16x1xf32>
      %cst_15 = arith.constant 9.99999974E-6 : f32
      %27 = vector.broadcast %cst_15 : f32 to vector<16x1xf32>
      %28 = arith.addf %26, %27 : vector<16x1xf32>
      %29 = math.rsqrt %28 : vector<16x1xf32>
      %30 = vector.broadcast %29 : vector<16x1xf32> to vector<16x128xf32>
      %31 = arith.mulf %21, %30 : vector<16x128xf32>
      %c0_16 = arith.constant 0 : index
      %c0_17 = arith.constant 0 : index
      %32 = vector.load %arg3[%c0_16, %c0_17] : memref<16x128xf32, #tpu.memory_space<vmem>>, vector<16x128xf32>
      %cst_18 = arith.constant dense<0.000000e+00> : vector<16xf32>
      %33 = vector.multi_reduction <add>, %32, %cst_18 [1] : vector<16x128xf32> to vector<16xf32>
      %34 = vector.shape_cast %33 : vector<16xf32> to vector<16x1xf32>
      %cst_19 = arith.constant 6.250000e-02 : f32
      %35 = vector.broadcast %cst_19 : f32 to vector<16x1xf32>
      %36 = arith.mulf %34, %35 : vector<16x1xf32>
      %37 = vector.broadcast %36 : vector<16x1xf32> to vector<16x128xf32>
      %38 = arith.subf %32, %37 : vector<16x128xf32>
      %39 = tpu.iota {dimensions = array<i32: 1>} : vector<16x128xi32>
      %c16_i32 = arith.constant 16 : i32
      %40 = vector.broadcast %c16_i32 : i32 to vector<16x128xi32>
      %41 = arith.cmpi slt, %39, %40 : vector<16x128xi32>
      %cst_20 = arith.constant 0.000000e+00 : f32
      %42 = vector.broadcast %cst_20 : f32 to vector<16x128xf32>
      %43 = arith.select %41, %38, %42 : vector<16x128xi1>, vector<16x128xf32>
      %44 = arith.mulf %43, %43 : vector<16x128xf32>
      %cst_21 = arith.constant dense<0.000000e+00> : vector<16xf32>
      %45 = vector.multi_reduction <add>, %44, %cst_21 [1] : vector<16x128xf32> to vector<16xf32>
      %46 = vector.shape_cast %45 : vector<16xf32> to vector<16x1xf32>
      %cst_22 = arith.constant 6.250000e-02 : f32
      %47 = vector.broadcast %cst_22 : f32 to vector<16x1xf32>
      %48 = arith.mulf %46, %47 : vector<16x1xf32>
      %cst_23 = arith.constant 9.99999974E-6 : f32
      %49 = vector.broadcast %cst_23 : f32 to vector<16x1xf32>
      %50 = arith.addf %48, %49 : vector<16x1xf32>
      %51 = math.rsqrt %50 : vector<16x1xf32>
      %52 = vector.broadcast %51 : vector<16x1xf32> to vector<16x128xf32>
      %53 = arith.mulf %43, %52 : vector<16x128xf32>
      %54 = arith.truncf %31 : vector<16x128xf32> to vector<16x128xbf16>
      %c0_24 = arith.constant 0 : index
      %c0_25 = arith.constant 0 : index
      %55 = vector.load %arg7[%c0_24, %c0_25] : memref<16x256xbf16, #tpu.memory_space<vmem>>, vector<16x128xbf16>
      tpu.vector_store %arg7[%c0_24, %c0_25], %54 {strides = array<i32>} : memref<16x256xbf16, #tpu.memory_space<vmem>>, vector<16x128xbf16>,
      %56 = arith.truncf %53 : vector<16x128xf32> to vector<16x128xbf16>
      %c0_26 = arith.constant 0 : index
      %c128 = arith.constant 128 : index
      %57 = vector.load %arg7[%c0_26, %c128] : memref<16x256xbf16, #tpu.memory_space<vmem>>, vector<16x128xbf16>
      tpu.vector_store %arg7[%c0_26, %c128], %56 {strides = array<i32>} : memref<16x256xbf16, #tpu.memory_space<vmem>>, vector<16x128xbf16>,
    } else {
    }
    %c0 = arith.constant 0 : index
    %c0_1 = arith.constant 0 : index
    %3 = vector.load %arg7[%c0, %c0_1] : memref<16x256xbf16, #tpu.memory_space<vmem>>, vector<16x256xbf16>
    %c0_2 = arith.constant 0 : index
    %c0_3 = arith.constant 0 : index
    %4 = vector.load %arg4[%c0_2, %c0_3] : memref<256x128xbf16, #tpu.memory_space<vmem>>, vector<256x128xbf16>
    %cst = arith.constant dense<0.000000e+00> : vector<16x128xf32>
    %5 = tpu.matmul %3, %4, %cst {dimension_numbers = #tpu.dot_dimension_numbers<[1], [0], [0], [1], [0, 0, 1, 1], [], []>} : vector<16x256xbf16>, vector<256x128xbf16>, vector<16x128xf32> -> vector<16x128xf32>
    %c0_4 = arith.constant 0 : index
    %c0_5 = arith.constant 0 : index
    %6 = vector.load %arg5[%c0_4, %c0_5] : memref<1x128xf32, #tpu.memory_space<vmem>>, vector<1x128xf32>
    %7 = vector.broadcast %6 : vector<1x128xf32> to vector<16x128xf32>
    %8 = arith.addf %5, %7 : vector<16x128xf32>
    %c0_6 = arith.constant 0 : index
    %c0_7 = arith.constant 0 : index
    %9 = vector.load %arg6[%c0_6, %c0_7] : memref<16x128xf32, #tpu.memory_space<vmem>>, vector<16x128xf32>
    tpu.vector_store %arg6[%c0_6, %c0_7], %8 {strides = array<i32>} : memref<16x128xf32, #tpu.memory_space<vmem>>, vector<16x128xf32>,
    return
  }
  func.func @transform_0(%arg0: i32, %arg1: i32) -> (i32, i32) {
    %c0_i32 = arith.constant 0 : i32
    %c0_i32_0 = arith.constant 0 : i32
    return %arg0, %c0_i32 : i32, i32
  }
  func.func @transform_1(%arg0: i32, %arg1: i32) -> (i32, i32) {
    %c0_i32 = arith.constant 0 : i32
    %c0_i32_0 = arith.constant 0 : i32
    return %arg0, %c0_i32 : i32, i32
  }
  func.func @transform_2(%arg0: i32, %arg1: i32) -> (i32, i32) {
    %c0_i32 = arith.constant 0 : i32
    %c0_i32_0 = arith.constant 0 : i32
    return %c0_i32, %arg1 : i32, i32
  }
  func.func @transform_3(%arg0: i32, %arg1: i32) -> (i32, i32) {
    %c0_i32 = arith.constant 0 : i32
    %c0_i32_0 = arith.constant 0 : i32
    return %c0_i32, %arg1 : i32, i32
  }
  func.func @transform_4(%arg0: i32, %arg1: i32) -> (i32, i32) {
    %c0_i32 = arith.constant 0 : i32
    return %arg0, %arg1 : i32, i32
  }
}

</mosaic_0001>

<bundles_post_ra>
// kernel: tpu_custom_call.1
= control target key start
LH: loop header
LB: loop body
LE: loop exit
PB: predicated region body
PF: predicated region fallthrough
CT: control target
= control target key end

     0   :  { %9 = vsyncpa [#allocation4], 0  ;;  %s664_s0 = inlined_call_operand.hbm [shape: f32[16,128], index: 0, kind: input, shape index: {}]   ;;  %s665_s1 = inlined_call_operand.hbm [shape: f32[16,128], index: 1, kind: input, shape index: {}]   ;;  %s666_s2 = inlined_call_operand.hbm [shape: bf16[256,128], index: 2, kind: input, shape index: {}]   ;;  %s667_s3 = inlined_call_operand.vmem [shape: f32[1,128], index: 3, kind: input, shape index: {}]   ;;  %s668_s4 = inlined_call_operand.hbm [shape: f32[16,128], index: 4, kind: output, shape index: {}]  }
   0x1   :  { %10 = vsyncpa [#allocation7], 0 }
   0x2   :  { %11 = vsyncpa [#allocation5], 0  ;;  %s29_s17 = sshll.u32 %s665_s1, 4  ;;  %s583_s18 = smov [#allocation6]   ;;  %s30_s17 = int_to_ptr.hbm [resolvable:$true] %s29_s17 }
   0x3   :  { %s31_s19 = sshll.u32 %s583_s18, 4  ;;  %s16_s22 = sshll.u32 %s664_s0, 4  ;;  %s32_s19 = int_to_ptr.vmem [resolvable:$true] %s31_s19  ;;  %s17_s22 = int_to_ptr.hbm [resolvable:$true] %s16_s22 }
   0x4   :  { %s584_s23 = smov 128   ;;  %s585_s24 = smov 8  }
   0x5   :  { %37 = dma.hbm_to_vmem [thread:$0]  %s30_s17, 256, %s32_s19, [#allocation7], %s584_s23, %s584_s23, %s585_s24  }
   0x6   :  { %s586_s25 = smov [#allocation3]   ;;  %s42_s1 = sshll.u32 %s666_s2, 4  ;;  %s43_s1 = int_to_ptr.hbm [resolvable:$true] %s42_s1 }
   0x7   :  { %s18_s26 = sshll.u32 %s586_s25, 4  ;;  %s587_s0 = smov [#allocation8]   ;;  %s19_s26 = int_to_ptr.vmem [resolvable:$true] %s18_s26 }
   0x8   :  { %24 = dma.hbm_to_vmem [thread:$0]  %s17_s22, 256, %s19_s26, [#allocation4], %s584_s23, %s584_s23, %s585_s24  }
   0x9   :  { %s44_s29 = sshll.u32 %s587_s0, 4  ;;  %s588_s30 = smov 64   ;;  %s45_s29 = int_to_ptr.vmem [resolvable:$true] %s44_s29 }
   0xa   :  { %s589_s5 = smov 4  }
   0xb   :  { %50 = dma.hbm_to_vmem [thread:$0]  %s43_s1, 2048, %s45_s29, [#allocation7], %s588_s30, %s588_s30, %s589_s5  }
   0xc   :  { %577 = dma.done.wait [#allocation4], 256  }
   0xd   :  { %578 = vsyncadd [#allocation4], 4294967040 }
   0xe   :  { %579 = dma.done.wait [#allocation7], 2304  }
   0xf   :  { %580 = vsyncadd [#allocation7], 4294964992  ;;  %v116_v0 = vld [vmem:[#allocation6] sm:$0xff]  ;;  %v69_v1 = vld [vmem:[#allocation3] sm:$0xff]  ;;  %v79_v4 = vlaneseq  ;;  %s590_s7 = smov [#allocation9]   ;;  %s349_s11 = sshll.u32 %s668_s4, 4  ;;  %s350_s11 = int_to_ptr.hbm [resolvable:$true] %s349_s11 }
  0x10   :  { %118 = vadd.xlane.f32.xlu1 %v116_v0  ;;  %71 = vadd.xlane.f32.xlu0 %v69_v1  ;;  %v117_v2 = vld [vmem:[#allocation6 + $0x8] sm:$0xff]  ;;  %v70_v3 = vld [vmem:[#allocation3 + $0x8] sm:$0xff]  ;;  %v443_v28 = vld [vmem:[#allocation8 + $0x30] sm:$0xff]  ;;  %s347_s8 = sshll.u32 %s590_s7, 4  ;;  %s348_s8 = int_to_ptr.vmem [resolvable:$true] %s347_s8 }
  0x11   :  { %v80_v5 = vand.u32 127, %v79_v4  ;;  %v444_v26 = vld [vmem:[#allocation8 + $0x38] sm:$0xff]  ;;  %v451_v29 = vld [vmem:[#allocation8 + $0x70] sm:$0xff]  ;;  %v442_v30 = vld [vmem:[#allocation8 + $0x28] sm:$0xff] }
  0x12   :  { %v452_v27 = vld [vmem:[#allocation8 + $0x78] sm:$0xff]  ;;  %313 = vmatpush.bf16.msra.mxu0 %v444_v26  ;;  %v450_v31 = vld [vmem:[#allocation8 + $0x68] sm:$0xff]  ;;  %v441_v32 = vld [vmem:[#allocation8 + $0x20] sm:$0xff] }
  0x13   :  { %vm126_vm0 = vcmp.lt.s32.totalorder %v80_v5, 16  ;;  %vm81_vm1 = vcmp.lt.s32.totalorder %v80_v5, 32  ;;  %327 = vmatpush.bf16.msra.mxu1 %v452_v27  ;;  %v449_v33 = vld [vmem:[#allocation8 + $0x60] sm:$0xff]  ;;  %v440_v34 = vld [vmem:[#allocation8 + $0x18] sm:$0xff]  ;;  %v439_v40 = vld [vmem:[#allocation8 + $0x10] sm:$0xff] }
  0x14   :  { %v448_v35 = vld [vmem:[#allocation8 + $0x58] sm:$0xff]  ;;  %v447_v41 = vld [vmem:[#allocation8 + $0x50] sm:$0xff]  ;;  %v438_v44 = vld [vmem:[#allocation8 + $0x8] sm:$0xff] }
  0x15   :  { %v446_v45 = vld [vmem:[#allocation8 + $0x48] sm:$0xff]  ;;  %v437_v46 = vld [vmem:[#allocation8] sm:$0xff] }
  0x16   :  { %314 = vmatpush.bf16.msra.mxu0 %v443_v28  ;;  %v445_v47 = vld [vmem:[#allocation8 + $0x40] sm:$0xff] }
  0x17   :  { %328 = vmatpush.bf16.msra.mxu1 %v451_v29 }
  0x18   :  { %120 = vadd.xlane.f32.xlu1 %v117_v2  ;;  %73 = vadd.xlane.f32.xlu0 %v70_v3 }
  0x1a   :  { %315 = vmatpush.bf16.msra.mxu0 %v442_v30 }
  0x1b   :  { %329 = vmatpush.bf16.msra.mxu1 %v450_v31 }
  0x1e   :  { %316 = vmatpush.bf16.msra.mxu0 %v441_v32  ;;  %v472_v32 = vld [vmem:[%s667_s3] ss:$0 sm:$0xff] }
  0x1f   :  { %330 = vmatpush.bf16.msra.mxu1 %v449_v33 }
  0x22   :  { %317 = vmatpush.bf16.msra.mxu0 %v440_v34 }
  0x23   :  { %331 = vmatpush.bf16.msra.mxu1 %v448_v35 }
  0x26   :  { %318 = vmatpush.bf16.msra.mxu0 %v439_v40 }
  0x27   :  { %332 = vmatpush.bf16.msra.mxu1 %v447_v41 }
  0x2a   :  { %319 = vmatpush.bf16.msra.mxu0 %v438_v44 }
  0x2b   :  { %333 = vmatpush.bf16.msra.mxu1 %v446_v45 }
  0x2e   :  { %320 = vmatpush.bf16.msra.mxu0 %v437_v46 }
  0x2f   :  { %334 = vmatpush.bf16.msra.mxu1 %v445_v47 }
  0x83   :  { %v119_v6 = vpop.xlane.xlu1 %118  ;;  %v72_v7 = vpop.xlane.xlu0 %71 }
  0x84   :  { %v122_v8 = vmul.f32 0.0625, %v119_v6  ;;  %v75_v9 = vmul.f32 0.03125, %v72_v7 }
  0x86   :  { %v124_v10 = vsub.f32 %v116_v0, %v122_v8  ;;  %v77_v11 = vsub.f32 %v69_v1, %v75_v9 }
  0x88   :  { %v632_v12 = vsel %vm126_vm0, %v124_v10, 0.0  ;;  %v635_v13 = vsel %vm81_vm1, %v77_v11, 0.0 }
  0x89   :  { %v129_v14 = vmul.f32 %v632_v12, %v632_v12  ;;  %v84_v15 = vmul.f32 %v635_v13, %v635_v13 }
  0x8b   :  { %v121_v16 = vpop.xlane.xlu1 %120  ;;  %131 = vadd.xlane.f32.xlu0 %v129_v14  ;;  %86 = vadd.xlane.f32.xlu2 %v84_v15  ;;  %v74_v17 = vpop.xlane.xlu0 %73 }
  0x8c   :  { %v123_v18 = vmul.f32 0.0625, %v121_v16  ;;  %v76_v19 = vmul.f32 0.03125, %v74_v17 }
  0x8e   :  { %v125_v20 = vsub.f32 %v117_v2, %v123_v18  ;;  %v78_v21 = vsub.f32 %v70_v3, %v76_v19 }
  0x90   :  { %v642_v22 = vsel %vm126_vm0, %v125_v20, 0.0  ;;  %v645_v23 = vsel %vm81_vm1, %v78_v21, 0.0 }
  0x91   :  { %v130_v24 = vmul.f32 %v642_v22, %v642_v22  ;;  %v85_v25 = vmul.f32 %v645_v23, %v645_v23 }
  0x93   :  { %133 = vadd.xlane.f32.xlu1 %v130_v24  ;;  %88 = vadd.xlane.f32.xlu2 %v85_v25 }
  0xfe   :  { %v87_v36 = vpop.xlane.xlu2 %86  ;;  %v132_v37 = vpop.xlane.xlu0 %131 }
  0xff   :  { %v90_v38 = vmul.f32 0.03125, %v87_v36  ;;  %v135_v39 = vmul.f32 0.0625, %v132_v37 }
 0x101   :  { %v92_v42 = vadd.f32 1e-05, %v90_v38  ;;  %v137_v43 = vadd.f32 1e-05, %v135_v39 }
 0x103   :  { %473 = vrsqrt.f32 %v92_v42  ;;  %vm100_vm4 = vweird.f32 %v92_v42  ;;  %vm145_vm6 = vweird.f32 %v137_v43 }
 0x104   :  { %475 = vrsqrt.f32 %v137_v43 }
 0x106   :  { %v134_v48 = vpop.xlane.xlu1 %133  ;;  %v89_v49 = vpop.xlane.xlu2 %88 }
 0x107   :  { %v136_v50 = vmul.f32 0.0625, %v134_v48  ;;  %v91_v51 = vmul.f32 0.03125, %v89_v49 }
 0x109   :  { %v474_v52 = vpop.eup %473  ;;  %v138_v53 = vadd.f32 1e-05, %v136_v50  ;;  %v93_v54 = vadd.f32 1e-05, %v91_v51 }
 0x10a   :  { %v476_v55 = vpop.eup %475  ;;  %v95_v56 = vmul.f32 %v474_v52, %v92_v42  ;;  %vm101_vm2 = vweird.f32 %v474_v52 }
 0x10b   :  { %v140_v57 = vmul.f32 %v476_v55, %v137_v43  ;;  %477 = vrsqrt.f32 %v138_v53  ;;  %vm146_vm3 = vweird.f32 %v476_v55  ;;  %vm102_vm5 = vmor %vm100_vm4, %vm101_vm2  ;;  %vm155_vm10 = vweird.f32 %v138_v53 }
 0x10c   :  { %v96_v58 = vmul.f32 %v474_v52, %v95_v56  ;;  %479 = vrsqrt.f32 %v93_v54  ;;  %vm147_vm7 = vmor %vm145_vm6, %vm146_vm3  ;;  %vm110_vm12 = vweird.f32 %v93_v54 }
 0x10d   :  { %v141_v59 = vmul.f32 %v476_v55, %v140_v57 }
 0x10e   :  { %v97_v60 = vmul.f32 0.5, %v96_v58 }
 0x10f   :  { %v142_v61 = vmul.f32 0.5, %v141_v59 }
 0x110   :  { %v98_v62 = vsub.f32 1.5, %v97_v60 }
 0x111   :  { %v478_v63 = vpop.eup %477  ;;  %v143_v0 = vsub.f32 1.5, %v142_v61 }
 0x112   :  { %v480_v1 = vpop.eup %479  ;;  %v99_v2 = vmul.f32 %v474_v52, %v98_v62  ;;  %v150_v3 = vmul.f32 %v478_v63, %v138_v53  ;;  %vm156_vm8 = vweird.f32 %v478_v63 }
 0x113   :  { %v144_v4 = vmul.f32 %v476_v55, %v143_v0  ;;  %v105_v5 = vmul.f32 %v480_v1, %v93_v54  ;;  %vm111_vm9 = vweird.f32 %v480_v1  ;;  %vm157_vm11 = vmor %vm155_vm10, %vm156_vm8 }
 0x114   :  { %v103_v6 = vsel %vm102_vm5, %v474_v52, %v99_v2  ;;  %v151_v7 = vmul.f32 %v478_v63, %v150_v3  ;;  %vm112_vm13 = vmor %vm110_vm12, %vm111_vm9 }
 0x115   :  { %v114_v8 = vmul.f32 %v103_v6, %v635_v13  ;;  %v148_v9 = vsel %vm147_vm7, %v476_v55, %v144_v4  ;;  %v106_v10 = vmul.f32 %v480_v1, %v105_v5 }
 0x116   :  { %v159_v11 = vmul.f32 %v148_v9, %v632_v12  ;;  %v152_v14 = vmul.f32 0.5, %v151_v7 }
 0x117   :  { %v107_v15 = vmul.f32 0.5, %v106_v10 }
 0x118   :  { %v456_v16 = vpack.c.bf16 %v159_v11, %v114_v8  ;;  %v153_v17 = vsub.f32 1.5, %v152_v14 }
 0x119   :  { %v108_v18 = vsub.f32 1.5, %v107_v15 }
 0x11a   :  { %457 = vst [vmem:[#allocation2] sm:$0xff] %v456_v16   ;;  %v154_v19 = vmul.f32 %v478_v63, %v153_v17 }
 0x11b   :  { %v109_v20 = vmul.f32 %v480_v1, %v108_v18 }
 0x11c   :  { %v158_v21 = vsel %vm157_vm11, %v478_v63, %v154_v19 }
 0x11d   :  { %v160_v13 = vmul.f32 %v158_v21, %v642_v22  ;;  %v113_v24 = vsel %vm112_vm13, %v480_v1, %v109_v20 }
 0x11e   :  { %v115_v12 = vmul.f32 %v113_v24, %v645_v23 }
 0x120   :  { %v461_v25 = vpack.c.bf16 %v160_v13, %v115_v12 }
 0x121   :  { %v365_v26 = vld [vmem:[#allocation2] sm:$0xf]  ;;  %v435_v28 = vld [vmem:[#allocation2 + $0x4] sm:$0xf] }
 0x122   :  { %463 = vst [vmem:[#allocation2 + $0x8] sm:$0xff] %v461_v25  }
 0x129   :  { %v436_v27 = vld [vmem:[#allocation2 + $0x4] sm:$0xf0]  ;;  %v367_v29 = vld [vmem:[#allocation2 + $0x8] sm:$0xf0] }
 0x12a   :  { %v366_v30 = vor.u32 %v436_v27, %v365_v26  ;;  %v370_v31 = vor.u32 %v435_v28, %v367_v29 }
 0x12c   :  { %321 = vmatmul.bf16.vlgmr.msra.gmra.mxu0 %v366_v30  ;;  %335 = vmatmul.bf16.vlgmr.msra.gmra.mxu1 %v370_v31 }
 0x1a9   :  { %v322_v33 = vpop.f32.mrf.mxu0  ;;  %v336_v34 = vpop.f32.mrf.mxu1 }
 0x1aa   :  { %v323_v22 = vadd.f32 %v472_v32, %v322_v33 }
 0x1ac   :  { %v337_v35 = vadd.f32 %v336_v34, %v323_v22 }
 0x1ae   :  { %341 = vst [vmem:[#allocation9] sm:$0xff] %v337_v35 }
 0x1b1   :  { %v324_v23 = vpop.f32.mrf.mxu0  ;;  %v338_v37 = vpop.f32.mrf.mxu1 }
 0x1b2   :  { %v325_v36 = vadd.f32 %v472_v32, %v324_v23 }
 0x1b4   :  { %v339_v38 = vadd.f32 %v338_v37, %v325_v36 }
 0x1b6   :  { %342 = vst [vmem:[#allocation9 + $0x8] sm:$0xff] %v339_v38 }
 0x1b7   :  { %355 = dma.vmem_to_hbm [thread:$0]  %s348_s8, 256, %s350_s11, [#allocation5], %s584_s23, %s584_s23, %s585_s24  }
 0x1b8   :  { %581 = dma.done.wait [#allocation5], 256  }
 0x1b9   :  { %582 = vsyncadd [#allocation5], 4294967040 }
 0x1ba   :  { %360 = vsyncpa [#allocation4], 1 }
 0x1bb   :  { %361 = vsyncpa [#allocation7], 1 }
 0x1bc   :  { %362 = vsyncpa [#allocation5], 1 }

</bundles_post_ra>
